<compile_context>
chip_gen: v6e
topology: v6e:2x2x1
jax: 0.10.0
libtpu: 0.0.40
codegen_flags: <defaults>
</compile_context>

<pallas_src>
import jax
import jax.numpy as jnp
from jax.experimental import pallas as pl
from jax.experimental.pallas import tpu as pltpu


# ----------------------------- kernels ------------------------------------ #

def _resident_kernel(x_ref, w1_ref, b1_ref, w2_ref, b2_ref, o_ref):
    # fc1: [tm, In_p] @ [In_p, H_p] -> f32 MXU accumulation
    h = jnp.dot(x_ref[...], w1_ref[...], preferred_element_type=jnp.float32)
    h = h + b1_ref[...]
    h = h * jax.nn.sigmoid(h)                 # SiLU in f32 (EUP)
    h = h.astype(w2_ref.dtype)                # back to MXU compute dtype
    # fc2: [tm, H_p] @ [H_p, Out_p]
    y = jnp.dot(h, w2_ref[...], preferred_element_type=jnp.float32)
    y = y + b2_ref[...]
    y = y * jax.nn.sigmoid(y)
    o_ref[...] = y.astype(o_ref.dtype)


def _ktiled_kernel(x_ref, w1_ref, b1_ref, w2_ref, b2_ref, o_ref, acc_ref):
    # Grid: (row tiles, H tiles).  Exact fusion (SiLU is elementwise):
    #   y = sum_k SiLU(x @ W1[:, k_tile] + b1[k_tile]) @ W2[k_tile, :]
    k = pl.program_id(1)

    @pl.when(k == 0)
    def _():
        acc_ref[...] = jnp.zeros_like(acc_ref)

    h = jnp.dot(x_ref[...], w1_ref[...], preferred_element_type=jnp.float32)
    h = h + b1_ref[...]
    h = h * jax.nn.sigmoid(h)
    h = h.astype(w2_ref.dtype)
    acc_ref[...] += jnp.dot(h, w2_ref[...], preferred_element_type=jnp.float32)

    @pl.when(k == pl.num_programs(1) - 1)
    def _():
        y = acc_ref[...] + b2_ref[...]
        y = y * jax.nn.sigmoid(y)
        o_ref[...] = y.astype(o_ref.dtype)


# ----------------------------- helpers ------------------------------------ #

def _round_up(a, b):
    return (a + b - 1) // b * b


def _cdiv(a, b):
    return (a + b - 1) // b


def _usable_vmem_bytes():
    """Generation-aware per-TensorCore VMEM budget with headroom."""
    try:
        cap = int(getattr(pltpu.get_tpu_info(), "vmem_capacity_bytes"))
    except Exception:
        cap = 64 << 20                       # conservative fallback (v7x-sized)
    if cap <= 0:
        cap = 64 << 20
    # ~109 MiB usable on v5e/v6e (128 MiB), ~54 MiB on v7x (64 MiB/TC)
    return int(cap * 0.85)


def prepare_projector_params(w1, b1, w2, b2, *, compute_dtype=None):
    """Pad/cast the weights ONCE (hoisted out of the per-call path).

    w1: [In, H], b1: [H], w2: [H, Out], b2: [Out].  Feature dims are
    zero-padded to multiples of 128 so kernel loads/stores are lane-dense;
    padding is numerically exact (SiLU(0)=0, padded W2 rows / biases are 0).
    compute_dtype=jnp.bfloat16 is recommended on v5e/v6e/v7x (f32 accumulation
    is kept inside the kernel); default keeps the weights' dtype.
    """
    In, H = w1.shape
    Out = w2.shape[1]
    cdt = jnp.dtype(compute_dtype) if compute_dtype is not None else jnp.dtype(w1.dtype)

    In_p, H_p, Out_p = (_round_up(d, 128) for d in (In, H, Out))

    def _pad2(a, rows, cols):
        a = a.astype(cdt)
        if a.shape != (rows, cols):
            a = jnp.pad(a, ((0, rows - a.shape[0]), (0, cols - a.shape[1])))
        return a

    def _pad_bias(b, n_p):
        b = b.astype(jnp.float32)
        if b.shape[0] != n_p:
            b = jnp.pad(b, (0, n_p - b.shape[0]))
        return b.reshape(1, n_p)

    return dict(
        w1=_pad2(w1, In_p, H_p),
        b1=_pad_bias(b1, H_p),
        w2=_pad2(w2, H_p, Out_p),
        b2=_pad_bias(b2, Out_p),
        dims=(In, H, Out),
        padded=(In_p, H_p, Out_p),
        compute_dtype=cdt,
    )


def projector_apply(x, params, *, tm_max=256, h_tile=512, out_dtype=None,
                    force_k_tiling=False):
    """Apply the projector to x: [N, In] -> [N, Out]."""
    In, H, Out = params["dims"]
    In_p, H_p, Out_p = params["padded"]
    cdt = params["compute_dtype"]
    w1p, b1p, w2p, b2p = params["w1"], params["b1"], params["w2"], params["b2"]

    N = x.shape[0]
    assert x.shape[1] == In, "feature dim mismatch"
    out_dtype = jnp.dtype(out_dtype) if out_dtype is not None else jnp.dtype(x.dtype)
    csz = cdt.itemsize
    osz = out_dtype.itemsize
    usable = _usable_vmem_bytes()

    # --- balanced row tile (multiple of 8): minimal ragged-N waste ----------
    n_row_tiles = max(1, _cdiv(N, max(8, tm_max)))
    tm = max(8, min(_round_up(tm_max, 8), _round_up(_cdiv(N, n_row_tiles), 8)))

    # --- footprint estimates & path selection -------------------------------
    resident_bytes = (In_p * H_p + H_p * Out_p) * csz + (H_p + Out_p) * 4

    def _per_step_resident(tm_):
        return (2 * tm_ * In_p * csz            # x tile (double buffered)
                + 2 * tm_ * Out_p * osz         # out tile (double buffered)
                + tm_ * H_p * (4 + csz)         # f32 h + compute-dtype copy
                + 2 * tm_ * Out_p * 4)          # f32 y temporaries

    use_resident = (not force_k_tiling) and \
        (resident_bytes + _per_step_resident(tm)) <= usable

    if not use_resident:
        # largest multiple of 128 that divides H_p and is <= target
        def _best_th(target):
            best, c = 128, 128
            while c <= min(target, H_p):
                if H_p % c == 0:
                    best = c
                c += 128
            return best

        def _ktiled_footprint(tm_, th_):
            return (2 * (In_p * th_ + th_ * Out_p) * csz   # W1/W2 tiles (dbl buf)
                    + 2 * th_ * 4 + Out_p * 4              # bias tiles
                    + 2 * tm_ * In_p * csz                 # x tile
                    + 2 * tm_ * Out_p * osz                # out tile
                    + tm_ * Out_p * 4                      # f32 accumulator
                    + tm_ * th_ * (4 + csz)                # f32 h + cast copy
                    + tm_ * Out_p * 4)                     # f32 y temp

        th = _best_th(h_tile)
        while _ktiled_footprint(tm, th) > usable and th > 128:
            th = _best_th(th - 128)
        while _ktiled_footprint(tm, th) > usable and tm > 8:
            tm = max(8, _round_up(tm // 2, 8))

    N_p = _round_up(N, tm)

    # --- pad x only when actually needed (row/lane padding) -----------------
    xp = x.astype(cdt)
    if (N_p, In_p) != (N, In):
        xp = jnp.pad(xp, ((0, N_p - N), (0, In_p - In)))

    # --- cost estimate (lets XLA schedule around the custom call) -----------
    cost = pl.CostEstimate(
        flops=2 * N_p * (In_p * H_p + H_p * Out_p),
        transcendentals=2 * N_p * (H_p + Out_p),
        bytes_accessed=(N_p * In_p * csz + (In_p * H_p + H_p * Out_p) * csz
                        + (H_p + Out_p) * 4 + N_p * Out_p * osz),
    )

    resident_kw = dict(pipeline_mode=pl.Buffered(1))  # constant index map -> 1 buffer

    if use_resident:
        footprint = resident_bytes + _per_step_resident(tm)
        vmem_limit = min(int(footprint * 1.5) + (4 << 20), usable)
        out = pl.pallas_call(
            _resident_kernel,
            out_shape=jax.ShapeDtypeStruct((N_p, Out_p), out_dtype),
            grid_spec=pltpu.PrefetchScalarGridSpec(
                num_scalar_prefetch=0,
                grid=(N_p // tm,),
                in_specs=[
                    pl.BlockSpec((tm, In_p), lambda i: (i, 0)),                    # x row tile
                    pl.BlockSpec((In_p, H_p), lambda i: (0, 0), **resident_kw),    # W1 (resident)
                    pl.BlockSpec((1, H_p), lambda i: (0, 0), **resident_kw),       # b1
                    pl.BlockSpec((H_p, Out_p), lambda i: (0, 0), **resident_kw),   # W2 (resident)
                    pl.BlockSpec((1, Out_p), lambda i: (0, 0), **resident_kw),     # b2
                ],
                out_specs=pl.BlockSpec((tm, Out_p), lambda i: (i, 0)),
            ),
            compiler_params=pltpu.CompilerParams(
                dimension_semantics=("parallel",),
                vmem_limit_bytes=vmem_limit,
            ),
            cost_estimate=cost,
        )(xp, w1p, b1p, w2p, b2p)
    else:
        footprint = _ktiled_footprint(tm, th)
        vmem_limit = min(int(footprint * 1.5) + (4 << 20), usable)
        out = pl.pallas_call(
            _ktiled_kernel,
            out_shape=jax.ShapeDtypeStruct((N_p, Out_p), out_dtype),
            grid_spec=pltpu.PrefetchScalarGridSpec(
                num_scalar_prefetch=0,
                grid=(N_p // tm, H_p // th),
                in_specs=[
                    pl.BlockSpec((tm, In_p), lambda i, k: (i, 0)),                 # x row tile
                    pl.BlockSpec((In_p, th), lambda i, k: (0, k)),                 # W1 column tile
                    pl.BlockSpec((1, th), lambda i, k: (0, k)),                    # b1 tile
                    pl.BlockSpec((th, Out_p), lambda i, k: (k, 0)),                # W2 row tile
                    pl.BlockSpec((1, Out_p), lambda i, k: (0, 0), **resident_kw),  # b2
                ],
                out_specs=pl.BlockSpec((tm, Out_p), lambda i, k: (i, 0)),
                scratch_shapes=[pltpu.VMEM((tm, Out_p), jnp.float32)],
            ),
            compiler_params=pltpu.CompilerParams(
                dimension_semantics=("parallel", "arbitrary"),
                vmem_limit_bytes=vmem_limit,
            ),
            cost_estimate=cost,
        )(xp, w1p, b1p, w2p, b2p)

    if (N_p, Out_p) != (N, Out):
        out = out[:N, :Out]
    return out


def projector(x, w1, b1, w2, b2, **kwargs):
    """One-shot convenience wrapper (prefer prepare_...() + apply() in loops)."""
    compute_dtype = kwargs.pop("compute_dtype", None)
    params = prepare_projector_params(w1, b1, w2, b2, compute_dtype=compute_dtype)
    return projector_apply(x, params, **kwargs)


def projector_ref(x, w1, b1, w2, b2):
    h = x @ w1 + b1
    h = h * jax.nn.sigmoid(h)
    y = h @ w2 + b2
    return y * jax.nn.sigmoid(y)


# ----------------------------- demo / test --------------------------------- #

if __name__ == "__main__":
    # Small shapes consistent with Projector(input_size, hidden_size, output_size)
    N, In, H, Out = 16, 32, 64, 32

    key = jax.random.PRNGKey(0)
    kx, kw1, kb1, kw2, kb2 = jax.random.split(key, 5)

    x = jax.random.normal(kx, (N, In), dtype=jnp.float32)

    # Deterministic init mimicking nn.Linear: U(-1/sqrt(fan_in), 1/sqrt(fan_in))
    lim1 = 1.0 / jnp.sqrt(jnp.float32(In))
    lim2 = 1.0 / jnp.sqrt(jnp.float32(H))
    w1 = jax.random.uniform(kw1, (In, H), jnp.float32, -lim1, lim1)
    b1 = jax.random.uniform(kb1, (H,), jnp.float32, -lim1, lim1)
    w2 = jax.random.uniform(kw2, (H, Out), jnp.float32, -lim2, lim2)
    b2 = jax.random.uniform(kb2, (Out,), jnp.float32, -lim2, lim2)

    ref = projector_ref(x, w1, b1, w2, b2)

    # 1) f32 resident-weight path (matches the PyTorch reference)
    params_f32 = prepare_projector_params(w1, b1, w2, b2)   # pad/cast once
    out = jax.block_until_ready(projector_apply(x, params_f32))
    assert out.shape == (N, Out)
    assert jnp.allclose(out, ref, atol=1e-5, rtol=1e-5)

    # 2) bf16 MXU compute (recommended on v5e/v6e/v7x), f32 accumulation
    params_bf16 = prepare_projector_params(w1, b1, w2, b2, compute_dtype=jnp.bfloat16)
    out_bf16 = jax.block_until_ready(projector_apply(x, params_bf16))
    assert jnp.allclose(out_bf16, ref, atol=5e-2, rtol=5e-2)

    # 3) K-tiled accumulator path (taken automatically when resident weights
    #    exceed the VMEM budget, e.g. big layers on v7x); forced here on small
    #    shapes to exercise the init/accumulate/finalize structure.
    N2, In2, H2, Out2 = 40, 128, 384, 128
    k2 = jax.random.split(jax.random.PRNGKey(1), 5)
    x2 = jax.random.normal(k2[0], (N2, In2), dtype=jnp.float32)
    w1b = jax.random.normal(k2[1], (In2, H2), dtype=jnp.float32) * 0.05
    b1b = jax.random.normal(k2[2], (H2,), dtype=jnp.float32) * 0.05
    w2b = jax.random.normal(k2[3], (H2, Out2), dtype=jnp.float32) * 0.05
    b2b = jax.random.normal(k2[4], (Out2,), dtype=jnp.float32) * 0.05
    params2 = prepare_projector_params(w1b, b1b, w2b, b2b)
    out2 = jax.block_until_ready(
        projector_apply(x2, params2, force_k_tiling=True, h_tile=128))
    ref2 = projector_ref(x2, w1b, b1b, w2b, b2b)
    assert out2.shape == (N2, Out2)
    assert jnp.allclose(out2, ref2, atol=1e-2, rtol=1e-2)

    print("KERNEL_OK")
</pallas_src>

<mosaic_0001>
module attributes {stable_mosaic.version = 11 : i64} {
  func.func @_resident_kernel(%arg0: i32, %arg1: memref<16x128xf32, #tpu.memory_space<vmem>>, %arg2: memref<128x128xf32, #tpu.memory_space<vmem>>, %arg3: memref<1x128xf32, #tpu.memory_space<vmem>>, %arg4: memref<128x128xf32, #tpu.memory_space<vmem>>, %arg5: memref<1x128xf32, #tpu.memory_space<vmem>>, %arg6: memref<16x128xf32, #tpu.memory_space<vmem>>) attributes {dimension_semantics = [#tpu.dimension_semantics<parallel>], iteration_bounds = array<i64: 1>, scalar_prefetch = 0 : i64, scratch_operands = 0 : i64, tpu.core_type = #tpu.core_type<tc>, window_params = [{transform_indices = @transform_0, window_bounds = array<i64: 16, 128>}, {pipeline_mode = #tpu.pipeline_mode<synchronous>, transform_indices = @transform_1, window_bounds = array<i64: 128, 128>}, {pipeline_mode = #tpu.pipeline_mode<synchronous>, transform_indices = @transform_2, window_bounds = array<i64: 1, 128>}, {pipeline_mode = #tpu.pipeline_mode<synchronous>, transform_indices = @transform_3, window_bounds = array<i64: 128, 128>}, {pipeline_mode = #tpu.pipeline_mode<synchronous>, transform_indices = @transform_4, window_bounds = array<i64: 1, 128>}, {transform_indices = @transform_5, window_bounds = array<i64: 16, 128>}]} {
    %c0 = arith.constant 0 : index
    %c0_0 = arith.constant 0 : index
    %0 = vector.load %arg1[%c0, %c0_0] : memref<16x128xf32, #tpu.memory_space<vmem>>, vector<16x128xf32>
    %c0_1 = arith.constant 0 : index
    %c0_2 = arith.constant 0 : index
    %1 = vector.load %arg2[%c0_1, %c0_2] : memref<128x128xf32, #tpu.memory_space<vmem>>, vector<128x128xf32>
    %cst = arith.constant dense<0.000000e+00> : vector<16x128xf32>
    %2 = tpu.matmul %0, %1, %cst {dimension_numbers = #tpu.dot_dimension_numbers<[1], [0], [0], [1], [0, 0, 1, 1], [], []>} : vector<16x128xf32>, vector<128x128xf32>, vector<16x128xf32> -> vector<16x128xf32>
    %c0_3 = arith.constant 0 : index
    %c0_4 = arith.constant 0 : index
    %3 = vector.load %arg3[%c0_3, %c0_4] : memref<1x128xf32, #tpu.memory_space<vmem>>, vector<1x128xf32>
    %4 = vector.broadcast %3 : vector<1x128xf32> to vector<16x128xf32>
    %5 = arith.addf %2, %4 : vector<16x128xf32>
    %6 = arith.negf %5 : vector<16x128xf32>
    %7 = math.exp %6 : vector<16x128xf32>
    %cst_5 = arith.constant 1.000000e+00 : f32
    %8 = vector.broadcast %cst_5 : f32 to vector<16x128xf32>
    %9 = arith.addf %8, %7 : vector<16x128xf32>
    %10 = arith.divf %8, %9 : vector<16x128xf32>
    %11 = arith.mulf %5, %10 : vector<16x128xf32>
    %c0_6 = arith.constant 0 : index
    %c0_7 = arith.constant 0 : index
    %12 = vector.load %arg4[%c0_6, %c0_7] : memref<128x128xf32, #tpu.memory_space<vmem>>, vector<128x128xf32>
    %cst_8 = arith.constant dense<0.000000e+00> : vector<16x128xf32>
    %13 = tpu.matmul %11, %12, %cst_8 {dimension_numbers = #tpu.dot_dimension_numbers<[1], [0], [0], [1], [0, 0, 1, 1], [], []>} : vector<16x128xf32>, vector<128x128xf32>, vector<16x128xf32> -> vector<16x128xf32>
    %c0_9 = arith.constant 0 : index
    %c0_10 = arith.constant 0 : index
    %14 = vector.load %arg5[%c0_9, %c0_10] : memref<1x128xf32, #tpu.memory_space<vmem>>, vector<1x128xf32>
    %15 = vector.broadcast %14 : vector<1x128xf32> to vector<16x128xf32>
    %16 = arith.addf %13, %15 : vector<16x128xf32>
    %17 = arith.negf %16 : vector<16x128xf32>
    %18 = math.exp %17 : vector<16x128xf32>
    %cst_11 = arith.constant 1.000000e+00 : f32
    %19 = vector.broadcast %cst_11 : f32 to vector<16x128xf32>
    %20 = arith.addf %19, %18 : vector<16x128xf32>
    %21 = arith.divf %19, %20 : vector<16x128xf32>
    %22 = arith.mulf %16, %21 : vector<16x128xf32>
    %c0_12 = arith.constant 0 : index
    %c0_13 = arith.constant 0 : index
    %23 = vector.load %arg6[%c0_12, %c0_13] : memref<16x128xf32, #tpu.memory_space<vmem>>, vector<16x128xf32>
    tpu.vector_store %arg6[%c0_12, %c0_13], %22 {strides = array<i32>} : memref<16x128xf32, #tpu.memory_space<vmem>>, vector<16x128xf32>,
    return
  }
  func.func @transform_0(%arg0: i32) -> (i32, i32) {
    %c0_i32 = arith.constant 0 : i32
    %c0_i32_0 = arith.constant 0 : i32
    return %arg0, %c0_i32 : i32, i32
  }
  func.func @transform_1(%arg0: i32) -> (i32, i32) {
    %c0_i32 = arith.constant 0 : i32
    %c0_i32_0 = arith.constant 0 : i32
    %c0_i32_1 = arith.constant 0 : i32
    return %c0_i32, %c0_i32_0 : i32, i32
  }
  func.func @transform_2(%arg0: i32) -> (i32, i32) {
    %c0_i32 = arith.constant 0 : i32
    %c0_i32_0 = arith.constant 0 : i32
    %c0_i32_1 = arith.constant 0 : i32
    return %c0_i32, %c0_i32_0 : i32, i32
  }
  func.func @transform_3(%arg0: i32) -> (i32, i32) {
    %c0_i32 = arith.constant 0 : i32
    %c0_i32_0 = arith.constant 0 : i32
    %c0_i32_1 = arith.constant 0 : i32
    return %c0_i32, %c0_i32_0 : i32, i32
  }
  func.func @transform_4(%arg0: i32) -> (i32, i32) {
    %c0_i32 = arith.constant 0 : i32
    %c0_i32_0 = arith.constant 0 : i32
    %c0_i32_1 = arith.constant 0 : i32
    return %c0_i32, %c0_i32_0 : i32, i32
  }
  func.func @transform_5(%arg0: i32) -> (i32, i32) {
    %c0_i32 = arith.constant 0 : i32
    %c0_i32_0 = arith.constant 0 : i32
    return %arg0, %c0_i32 : i32, i32
  }
}

</mosaic_0001>

<bundles_post_ra>
// kernel: tpu_custom_call.1
= control target key start
LH: loop header
LB: loop body
LE: loop exit
PB: predicated region body
PF: predicated region fallthrough
CT: control target
= control target key end

     0   :  { %10 = vsyncpa [#allocation3], 0  ;;  %s594_s0 = inlined_call_operand.hbm [shape: f32[16,128], index: 0, kind: input, shape index: {}]   ;;  %s595_s1 = inlined_call_operand.hbm [shape: f32[128,128], index: 1, kind: input, shape index: {}]   ;;  %s596_s2 = inlined_call_operand.vmem [shape: f32[1,128], index: 2, kind: input, shape index: {}]   ;;  %s597_s3 = inlined_call_operand.hbm [shape: f32[128,128], index: 3, kind: input, shape index: {}]   ;;  %s598_s4 = inlined_call_operand.vmem [shape: f32[1,128], index: 4, kind: input, shape index: {}]   ;;  %s599_s5 = inlined_call_operand.hbm [shape: f32[16,128], index: 5, kind: output, shape index: {}]  }
   0x1   :  { %11 = vsyncpa [#allocation6], 0 }
   0x2   :  { %12 = vsyncpa [#allocation4], 0  ;;  %s528_s18 = smov [#allocation5]   ;;  %s529_s20 = smov [#allocation2]  }
   0x3   :  { %s30_s19 = sshll.u32 %s528_s18, 4  ;;  %s18_s21 = sshll.u32 %s529_s20, 4  ;;  %s31_s19 = int_to_ptr.vmem [resolvable:$true] %s30_s19  ;;  %s19_s21 = int_to_ptr.vmem [resolvable:$true] %s18_s21 }
   0x4   :  { %s450_s22 = scalar_lea.vmem %s31_s19, 2048  ;;  %p455_p1 = scmp.lt.s32.totalorder %s31_s19, %s31_s19 }
   0x5   :  { %p451_p0 = scmp.ne.s32.totalorder %s31_s19, %s450_s22  ;;  %p456_p2 = scmp.lt.s32.totalorder %s450_s22, %s450_s22 }
   0x7   :  { %p457_p3 = por %p456_p2, %p455_p1 }
   0x9   :  { %p458_p4 = pnand %p457_p3, %p451_p0 }
   0xb   :  { %461 = shalt.err (!%p458_p4)
}
   0xc   :  { %s530_s23 = smov 128   ;;  %s531_s24 = smov 8  }
   0xd   :  { %36 = dma.hbm_to_vmem [thread:$0]  %s595_s1, 2048, %s31_s19, [#allocation6], %s530_s23, %s530_s23, %s531_s24  }
   0xe   :  { %s470_s27 = scalar_lea.vmem %s19_s21, 256  ;;  %p475_p6 = scmp.lt.s32.totalorder %s19_s21, %s19_s21 }
   0xf   :  { %p471_p5 = scmp.ne.s32.totalorder %s19_s21, %s470_s27  ;;  %p476_p7 = scmp.lt.s32.totalorder %s470_s27, %s470_s27 }
  0x11   :  { %p477_p8 = por %p476_p7, %p475_p6 }
  0x13   :  { %p478_p9 = pnand %p477_p8, %p471_p5 }
  0x15   :  { %481 = shalt.err (!%p478_p9)
}
  0x16   :  { %24 = dma.hbm_to_vmem [thread:$0]  %s594_s0, 256, %s19_s21, [#allocation3], %s530_s23, %s530_s23, %s531_s24  }
  0x17   :  { %s532_s30 = smov [#allocation7]  }
  0x18   :  { %s44_s6 = sshll.u32 %s532_s30, 4  ;;  %s45_s6 = int_to_ptr.vmem [resolvable:$true] %s44_s6 }
  0x19   :  { %s490_s7 = scalar_lea.vmem %s45_s6, 2048  ;;  %p495_p11 = scmp.lt.s32.totalorder %s45_s6, %s45_s6 }
  0x1a   :  { %p491_p10 = scmp.ne.s32.totalorder %s45_s6, %s490_s7  ;;  %p496_p12 = scmp.lt.s32.totalorder %s490_s7, %s490_s7 }
  0x1c   :  { %p497_p13 = por %p496_p12, %p495_p11 }
  0x1e   :  { %p498_p0 = pnand %p497_p13, %p491_p10 }
  0x20   :  { %501 = shalt.err (!%p498_p0)
}
  0x21   :  { %50 = dma.hbm_to_vmem [thread:$0]  %s597_s3, 2048, %s45_s6, [#allocation6], %s530_s23, %s530_s23, %s531_s24  }
  0x22   :  { %522 = dma.done.wait [#allocation3], 256  }
  0x23   :  { %523 = vsyncadd [#allocation3], 4294967040 }
  0x24   :  { %524 = dma.done.wait [#allocation6], 4096  }
  0x25   :  { %525 = vsyncadd [#allocation6], 4294963200  ;;  %v79_v0 = vld [vmem:[#allocation5 + $0x78] sm:$0xff]  ;;  %v78_v1 = vld [vmem:[#allocation5 + $0x70] sm:$0xff]  ;;  %s533_s10 = smov [#allocation8]  }
  0x26   :  { %350 = vmatprep.subr.mxu0 %v79_v0  ;;  %v77_v2 = vld [vmem:[#allocation5 + $0x68] sm:$0xff]  ;;  %v76_v3 = vld [vmem:[#allocation5 + $0x60] sm:$0xff]  ;;  %v62_v4 = vld [vmem:[#allocation2] sm:$0xff]  ;;  %s295_s11 = sshll.u32 %s533_s10, 4  ;;  %s296_s11 = int_to_ptr.vmem [resolvable:$true] %s295_s11 }
  0x27   :  { %351 = vmatpush3.msra.mxu0 %v79_v0  ;;  %v75_v5 = vld [vmem:[#allocation5 + $0x58] sm:$0xff]  ;;  %382 = vmatprep.mubr.f32.mxu0 %v62_v4  ;;  %v74_v6 = vld [vmem:[#allocation5 + $0x50] sm:$0xff]  ;;  %v73_v7 = vld [vmem:[#allocation5 + $0x48] sm:$0xff]  ;;  %p507_p2 = scmp.lt.s32.totalorder %s296_s11, %s296_s11 }
  0x28   :  { %352 = vmatprep.subr.mxu0 %v78_v1  ;;  %v72_v8 = vld [vmem:[#allocation5 + $0x40] sm:$0xff]  ;;  %v71_v9 = vld [vmem:[#allocation5 + $0x38] sm:$0xff]  ;;  %v70_v10 = vld [vmem:[#allocation5 + $0x30] sm:$0xff] }
  0x29   :  { %353 = vmatpush3.msra.mxu0 %v78_v1  ;;  %v69_v11 = vld [vmem:[#allocation5 + $0x28] sm:$0xff]  ;;  %v68_v12 = vld [vmem:[#allocation5 + $0x20] sm:$0xff]  ;;  %v67_v13 = vld [vmem:[#allocation5 + $0x18] sm:$0xff] }
  0x2a   :  { %354 = vmatprep.subr.mxu0 %v77_v2  ;;  %v66_v14 = vld [vmem:[#allocation5 + $0x10] sm:$0xff]  ;;  %v65_v15 = vld [vmem:[#allocation5 + $0x8] sm:$0xff]  ;;  %v64_v16 = vld [vmem:[#allocation5] sm:$0xff] }
  0x2b   :  { %355 = vmatpush3.msra.mxu0 %v77_v2  ;;  %v63_v17 = vld [vmem:[#allocation2 + $0x8] sm:$0xff]  ;;  %v190_v19 = vld [vmem:[#allocation7 + $0x70] sm:$0xff]  ;;  %v189_v20 = vld [vmem:[#allocation7 + $0x68] sm:$0xff] }
  0x2c   :  { %356 = vmatprep.subr.mxu0 %v76_v3  ;;  %v191_v18 = vld [vmem:[#allocation7 + $0x78] sm:$0xff]  ;;  %v188_v21 = vld [vmem:[#allocation7 + $0x60] sm:$0xff]  ;;  %v186_v23 = vld [vmem:[#allocation7 + $0x50] sm:$0xff] }
  0x2d   :  { %357 = vmatpush3.msra.mxu0 %v76_v3  ;;  %385 = vmatprep.subr.mxu1 %v191_v18  ;;  %v187_v22 = vld [vmem:[#allocation7 + $0x58] sm:$0xff]  ;;  %v185_v24 = vld [vmem:[#allocation7 + $0x48] sm:$0xff]  ;;  %v184_v25 = vld [vmem:[#allocation7 + $0x40] sm:$0xff] }
  0x2e   :  { %358 = vmatprep.subr.mxu0 %v75_v5  ;;  %386 = vmatpush3.msra.mxu1 %v191_v18  ;;  %v183_v26 = vld [vmem:[#allocation7 + $0x38] sm:$0xff]  ;;  %v182_v27 = vld [vmem:[#allocation7 + $0x30] sm:$0xff]  ;;  %v181_v28 = vld [vmem:[#allocation7 + $0x28] sm:$0xff] }
  0x2f   :  { %359 = vmatpush3.msra.mxu0 %v75_v5  ;;  %387 = vmatprep.subr.mxu1 %v190_v19  ;;  %v180_v29 = vld [vmem:[#allocation7 + $0x20] sm:$0xff]  ;;  %v179_v30 = vld [vmem:[#allocation7 + $0x18] sm:$0xff]  ;;  %v178_v31 = vld [vmem:[#allocation7 + $0x10] sm:$0xff] }
  0x30   :  { %360 = vmatprep.subr.mxu0 %v74_v6  ;;  %388 = vmatpush3.msra.mxu1 %v190_v19  ;;  %v177_v32 = vld [vmem:[#allocation7 + $0x8] sm:$0xff]  ;;  %v176_v33 = vld [vmem:[#allocation7] sm:$0xff]  ;;  %v308_v34 = vld [vmem:[%s596_s2] ss:$0 sm:$0xff] }
  0x31   :  { %361 = vmatpush3.msra.mxu0 %v74_v6  ;;  %389 = vmatprep.subr.mxu1 %v189_v20  ;;  %v311_v49 = vld [vmem:[%s598_s4] ss:$0 sm:$0xff]  ;;  %s502_s4 = scalar_lea.vmem %s296_s11, 256 }
  0x32   :  { %362 = vmatprep.subr.mxu0 %v73_v7  ;;  %390 = vmatpush3.msra.mxu1 %v189_v20  ;;  %p503_p1 = scmp.ne.s32.totalorder %s296_s11, %s502_s4  ;;  %p508_p3 = scmp.lt.s32.totalorder %s502_s4, %s502_s4 }
  0x33   :  { %363 = vmatpush3.msra.mxu0 %v73_v7  ;;  %391 = vmatprep.subr.mxu1 %v188_v21 }
  0x34   :  { %364 = vmatprep.subr.mxu0 %v72_v8  ;;  %392 = vmatpush3.msra.mxu1 %v188_v21  ;;  %p509_p4 = por %p508_p3, %p507_p2 }
  0x35   :  { %365 = vmatpush3.msra.mxu0 %v72_v8  ;;  %393 = vmatprep.subr.mxu1 %v187_v22 }
  0x36   :  { %366 = vmatprep.subr.mxu0 %v71_v9  ;;  %394 = vmatpush3.msra.mxu1 %v187_v22  ;;  %p510_p5 = pnand %p509_p4, %p503_p1 }
  0x37   :  { %367 = vmatpush3.msra.mxu0 %v71_v9  ;;  %395 = vmatprep.subr.mxu1 %v186_v23 }
  0x38   :  { %368 = vmatprep.subr.mxu0 %v70_v10  ;;  %396 = vmatpush3.msra.mxu1 %v186_v23 }
  0x39   :  { %369 = vmatpush3.msra.mxu0 %v70_v10  ;;  %397 = vmatprep.subr.mxu1 %v185_v24 }
  0x3a   :  { %370 = vmatprep.subr.mxu0 %v69_v11  ;;  %398 = vmatpush3.msra.mxu1 %v185_v24 }
  0x3b   :  { %371 = vmatpush3.msra.mxu0 %v69_v11  ;;  %399 = vmatprep.subr.mxu1 %v184_v25 }
  0x3c   :  { %372 = vmatprep.subr.mxu0 %v68_v12  ;;  %400 = vmatpush3.msra.mxu1 %v184_v25 }
  0x3d   :  { %373 = vmatpush3.msra.mxu0 %v68_v12  ;;  %401 = vmatprep.subr.mxu1 %v183_v26 }
  0x3e   :  { %374 = vmatprep.subr.mxu0 %v67_v13  ;;  %402 = vmatpush3.msra.mxu1 %v183_v26 }
  0x3f   :  { %375 = vmatpush3.msra.mxu0 %v67_v13  ;;  %403 = vmatprep.subr.mxu1 %v182_v27 }
  0x40   :  { %376 = vmatprep.subr.mxu0 %v66_v14  ;;  %404 = vmatpush3.msra.mxu1 %v182_v27 }
  0x41   :  { %377 = vmatpush3.msra.mxu0 %v66_v14  ;;  %405 = vmatprep.subr.mxu1 %v181_v28 }
  0x42   :  { %378 = vmatprep.subr.mxu0 %v65_v15  ;;  %406 = vmatpush3.msra.mxu1 %v181_v28 }
  0x43   :  { %379 = vmatpush3.msra.mxu0 %v65_v15  ;;  %407 = vmatprep.subr.mxu1 %v180_v29 }
  0x44   :  { %380 = vmatprep.subr.mxu0 %v64_v16  ;;  %408 = vmatpush3.msra.mxu1 %v180_v29 }
  0x45   :  { %381 = vmatpush3.msra.mxu0 %v64_v16  ;;  %409 = vmatprep.subr.mxu1 %v179_v30 }
  0x46   :  { %383 = vmatmul.mubr.f32.vlgmr.msra.gmra.mxu0 %v63_v17  ;;  %410 = vmatpush3.msra.mxu1 %v179_v30 }
  0x47   :  { %411 = vmatprep.subr.mxu1 %v178_v31 }
  0x48   :  { %412 = vmatpush3.msra.mxu1 %v178_v31 }
  0x49   :  { %413 = vmatprep.subr.mxu1 %v177_v32 }
  0x4a   :  { %414 = vmatpush3.msra.mxu1 %v177_v32 }
  0x4b   :  { %415 = vmatprep.subr.mxu1 %v176_v33 }
  0x4c   :  { %416 = vmatpush3.msra.mxu1 %v176_v33 }
 0x106   :  { %v384_v35 = vpop.f32.mrf.mxu0 }
 0x107   :  { %v159_v36 = vadd.f32 %v384_v35, %v308_v34 }
 0x108   :  { %v153_v37 = vpop.f32.mrf.mxu0 }
 0x109   :  { %v310_v38 = vmul.f32 -1.442695, %v159_v36  ;;  %v154_v39 = vadd.f32 %v308_v34, %v153_v37 }
 0x10b   :  { %426 = vpow2.f32 %v310_v38  ;;  %v309_v40 = vmul.f32 -1.442695, %v154_v39 }
 0x10d   :  { %428 = vpow2.f32 %v309_v40 }
 0x118   :  { %v427_v41 = vpop.eup %426 }
 0x119   :  { %v169_v42 = vadd.f32 1.0, %v427_v41 }
 0x11a   :  { %v429_v43 = vpop.eup %428 }
 0x11b   :  { %v168_v44 = vadd.f32 1.0, %v429_v43  ;;  %430 = vrcp.f32 %v169_v42 }
 0x11d   :  { %432 = vrcp.f32 %v168_v44 }
 0x128   :  { %v431_v45 = vpop.eup %430 }
 0x129   :  { %v175_v48 = vmul.f32 %v431_v45, %v159_v36 }
 0x12a   :  { %v433_v46 = vpop.eup %432 }
 0x12b   :  { %v174_v47 = vmul.f32 %v433_v46, %v154_v39 }
 0x12d   :  { %417 = vmatprep.mubr.f32.mxu1 %v174_v47 }
 0x12e   :  { %418 = vmatmul.mubr.f32.vlgmr.msra.gmra.mxu1 %v175_v48 }
 0x1ee   :  { %v419_v50 = vpop.f32.mrf.mxu1 }
 0x1ef   :  { %v271_v51 = vadd.f32 %v419_v50, %v311_v49 }
 0x1f0   :  { %v265_v52 = vpop.f32.mrf.mxu1 }
 0x1f1   :  { %v313_v53 = vmul.f32 -1.442695, %v271_v51  ;;  %v266_v54 = vadd.f32 %v311_v49, %v265_v52 }
 0x1f3   :  { %434 = vpow2.f32 %v313_v53  ;;  %v312_v55 = vmul.f32 -1.442695, %v266_v54 }
 0x1f5   :  { %436 = vpow2.f32 %v312_v55 }
 0x200   :  { %v435_v56 = vpop.eup %434 }
 0x201   :  { %v281_v57 = vadd.f32 1.0, %v435_v56 }
 0x202   :  { %v437_v58 = vpop.eup %436 }
 0x203   :  { %438 = vrcp.f32 %v281_v57  ;;  %v280_v59 = vadd.f32 1.0, %v437_v58 }
 0x205   :  { %440 = vrcp.f32 %v280_v59 }
 0x210   :  { %v439_v60 = vpop.eup %438 }
 0x211   :  { %v287_v61 = vmul.f32 %v439_v60, %v271_v51 }
 0x212   :  { %v441_v62 = vpop.eup %440 }
 0x213   :  { %289 = vst [vmem:[#allocation8 + $0x8] sm:$0xff] %v287_v61  ;;  %v286_v63 = vmul.f32 %v441_v62, %v266_v54 }
 0x215   :  { %288 = vst [vmem:[#allocation8] sm:$0xff] %v286_v63 }
 0x216   :  { %513 = shalt.err (!%p510_p5)
}
 0x217   :  { %301 = dma.vmem_to_hbm [thread:$0]  %s296_s11, 256, %s599_s5, [#allocation4], %s530_s23, %s530_s23, %s531_s24  }
 0x218   :  { %526 = dma.done.wait [#allocation4], 256  }
 0x219   :  { %527 = vsyncadd [#allocation4], 4294967040 }
 0x21a   :  { %305 = vsyncpa [#allocation3], 1 }
 0x21b   :  { %306 = vsyncpa [#allocation6], 1 }
 0x21c   :  { %307 = vsyncpa [#allocation4], 1 }

</bundles_post_ra>
